<compile_context>
chip_gen: v5e
topology: v5e:2x2
jax: 0.10.0
libtpu: 0.0.40
codegen_flags: <defaults>
</compile_context>

<pallas_src>
import jax
import jax.numpy as jnp
from jax.experimental import pallas as pl
from jax.experimental.pallas import tpu as pltpu


def _normalize_kernel(img_ref, const_ref, out_ref):
    # img_ref:   (TM, TN)  image tile, native dtype
    # const_ref: (TM, 2)   f32 per-row constants: [:, 0] = mean, [:, 1] = 1/std
    # out_ref:   (TM, TN)  native dtype
    x = img_ref[...].astype(jnp.float32)
    c = const_ref[...]
    mean = c[:, 0:1]
    inv_std = c[:, 1:2]
    out_ref[...] = ((x - mean) * inv_std).astype(out_ref.dtype)


def _choose_tiles(rows, cols, dtype):
    """Pick (TM, TN) targeting ~4 MiB blocks, lane-dense, megacore-friendly."""
    itemsize = jnp.dtype(dtype).itemsize
    # Sublane packing: 2-byte dtypes pack 2 rows per sublane, 1-byte pack 4.
    sub_align = {4: 8, 2: 16, 1: 32}.get(itemsize, 8)

    budget_elems = (4 << 20) // itemsize  # ~4 MiB per block in the image dtype

    # Row tile: full extent when small (always legal), else 512 (a multiple of
    # every sublane-pack factor).
    TM = rows if rows <= 512 else 512

    # Lane tile: as wide as the budget allows (lane-dense DMA is the win);
    # multiple of 128 unless it covers the full extent.
    rem = max(128, budget_elems // TM)
    if cols <= rem:
        TN = cols
    else:
        TN = max(128, (rem // 128) * 128)

    # Megacore (v7x: 2 TensorCores/chip): guarantee >= 2 blocks along a
    # "parallel" axis once the problem is big enough to be worth splitting.
    total_bytes = rows * cols * itemsize
    if pl.cdiv(rows, TM) * pl.cdiv(cols, TN) < 2 and total_bytes >= (1 << 20):
        if cols >= 2 * 128:
            half = pl.cdiv(cols, 2)
            TN = max(128, ((half + 127) // 128) * 128)
        elif rows >= 2 * sub_align:
            half = pl.cdiv(rows, 2)
            TM = max(sub_align, ((half + sub_align - 1) // sub_align) * sub_align)

    return TM, TN


def normalization_forward(img, mean, std):
    """(img - mean) / std with per-channel mean/std, NCHW layout.

    img:  (N, C, H, W)
    mean: (C,)
    std:  (C,)
    """
    N, C, H, W = img.shape
    rows, cols = N * C, H * W
    itemsize = jnp.dtype(img.dtype).itemsize

    # Per-row constants kept in float32 (no rounding of mean / 1/std even for
    # bf16/f16 images). Reciprocal precomputed once per channel: kernel hot
    # path is subtract + multiply only (no EUP / divide dependency).
    mean_f32 = jnp.tile(mean.astype(jnp.float32), N)          # (rows,)
    inv_std_f32 = jnp.tile(1.0 / std.astype(jnp.float32), N)  # (rows,)
    consts = jnp.stack([mean_f32, inv_std_f32], axis=-1)       # (rows, 2) f32

    # Lane-dense 2D view: rows = N*C (one channel of one image per row),
    # cols = H*W (lane dimension).
    img2 = img.reshape(rows, cols)

    TM, TN = _choose_tiles(rows, cols, img.dtype)
    grid = (pl.cdiv(rows, TM), pl.cdiv(cols, TN))

    cost = pl.CostEstimate(
        flops=2 * rows * cols,
        transcendentals=0,
        bytes_accessed=2 * rows * cols * itemsize + rows * 2 * 4,
    )

    out2 = pl.pallas_call(
        _normalize_kernel,
        out_shape=jax.ShapeDtypeStruct((rows, cols), img.dtype),
        grid_spec=pltpu.PrefetchScalarGridSpec(
            num_scalar_prefetch=0,
            grid=grid,
            in_specs=[
                # lane-dense image tile
                pl.BlockSpec((TM, TN), lambda i, j: (i, j)),
                # merged per-row constants: same row block, lane-independent
                pl.BlockSpec((TM, 2), lambda i, j: (i, 0)),
            ],
            out_specs=pl.BlockSpec((TM, TN), lambda i, j: (i, j)),
        ),
        compiler_params=pltpu.CompilerParams(
            dimension_semantics=("parallel", "parallel"),
            # Raises v5e's 16 MiB scoped default so ~4 MiB double-buffered
            # in+out blocks fit; stays under v7x's 64 MiB physical VMEM/TC.
            vmem_limit_bytes=48 * 1024 * 1024,
        ),
        cost_estimate=cost,
    )(img2, consts)

    return out2.reshape(N, C, H, W)


if __name__ == "__main__":
    key = jax.random.PRNGKey(0)
    k_img, _ = jax.random.split(key)

    N, C, H, W = 2, 4, 16, 16
    img = jax.random.uniform(k_img, (N, C, H, W), dtype=jnp.float32)

    # Deterministic per-channel normalization constants (ImageNet-style,
    # extended to 4 channels since this is a synthetic example).
    mean = jnp.array([0.485, 0.456, 0.406, 0.5], dtype=jnp.float32)
    std = jnp.array([0.229, 0.224, 0.225, 0.25], dtype=jnp.float32)

    out = normalization_forward(img, mean, std)
    out = jax.block_until_ready(out)

    # Reference check in plain JAX (same semantics as the PyTorch module).
    ref = (img - mean.reshape(1, C, 1, 1)) / std.reshape(1, C, 1, 1)
    assert out.shape == (N, C, H, W)
    # Kernel uses precomputed 1/std (a couple of ULPs vs a per-element divide).
    assert jnp.allclose(out, ref, atol=1e-5, rtol=1e-5)

    print("KERNEL_OK")
</pallas_src>

<mosaic_0001>
module attributes {stable_mosaic.version = 11 : i64} {
  func.func @_normalize_kernel(%arg0: i32, %arg1: i32, %arg2: memref<8x256xf32, #tpu.memory_space<vmem>>, %arg3: memref<8x2xf32, #tpu.memory_space<vmem>>, %arg4: memref<8x256xf32, #tpu.memory_space<vmem>>) attributes {dimension_semantics = [#tpu.dimension_semantics<parallel>, #tpu.dimension_semantics<parallel>], iteration_bounds = array<i64: 1, 1>, scalar_prefetch = 0 : i64, scratch_operands = 0 : i64, tpu.core_type = #tpu.core_type<tc>, window_params = [{transform_indices = @transform_0, window_bounds = array<i64: 8, 256>}, {transform_indices = @transform_1, window_bounds = array<i64: 8, 2>}, {transform_indices = @transform_2, window_bounds = array<i64: 8, 256>}]} {
    %c0 = arith.constant 0 : index
    %c0_0 = arith.constant 0 : index
    %0 = vector.load %arg2[%c0, %c0_0] : memref<8x256xf32, #tpu.memory_space<vmem>>, vector<8x256xf32>
    %c0_1 = arith.constant 0 : index
    %c0_2 = arith.constant 0 : index
    %1 = vector.load %arg3[%c0_1, %c0_2] : memref<8x2xf32, #tpu.memory_space<vmem>>, vector<8x2xf32>
    %2 = vector.extract_strided_slice %1 {offsets = [0, 0], sizes = [8, 1], strides = [1, 1]} : vector<8x2xf32> to vector<8x1xf32>
    %3 = vector.extract_strided_slice %1 {offsets = [0, 1], sizes = [8, 1], strides = [1, 1]} : vector<8x2xf32> to vector<8x1xf32>
    %4 = vector.broadcast %2 : vector<8x1xf32> to vector<8x256xf32>
    %5 = arith.subf %0, %4 : vector<8x256xf32>
    %6 = vector.broadcast %3 : vector<8x1xf32> to vector<8x256xf32>
    %7 = arith.mulf %5, %6 : vector<8x256xf32>
    %c0_3 = arith.constant 0 : index
    %c0_4 = arith.constant 0 : index
    %8 = vector.load %arg4[%c0_3, %c0_4] : memref<8x256xf32, #tpu.memory_space<vmem>>, vector<8x256xf32>
    tpu.vector_store %arg4[%c0_3, %c0_4], %7 {strides = array<i32>} : memref<8x256xf32, #tpu.memory_space<vmem>>, vector<8x256xf32>,
    return
  }
  func.func @transform_0(%arg0: i32, %arg1: i32) -> (i32, i32) {
    %c0_i32 = arith.constant 0 : i32
    return %arg0, %arg1 : i32, i32
  }
  func.func @transform_1(%arg0: i32, %arg1: i32) -> (i32, i32) {
    %c0_i32 = arith.constant 0 : i32
    %c0_i32_0 = arith.constant 0 : i32
    return %arg0, %c0_i32 : i32, i32
  }
  func.func @transform_2(%arg0: i32, %arg1: i32) -> (i32, i32) {
    %c0_i32 = arith.constant 0 : i32
    return %arg0, %arg1 : i32, i32
  }
}

</mosaic_0001>

<bundles_post_ra>
// kernel: tpu_custom_call.1
= control target key start
LH: loop header
LB: loop body
LE: loop exit
PB: predicated region body
PF: predicated region fallthrough
CT: control target
= control target key end

     0   :  { %7 = vsyncpa [#allocation3], 0  ;;  %s147_s0 = inlined_call_operand.hbm [shape: f32[8,256], index: 0, kind: input, shape index: {}]   ;;  %s148_s1 = inlined_call_operand.vmem [shape: f32[8,2], index: 1, kind: input, shape index: {}]   ;;  %s149_s2 = inlined_call_operand.hbm [shape: f32[8,256], index: 2, kind: output, shape index: {}]  }
   0x1   :  { %8 = vsyncpa [#allocation4], 0  ;;  %s14_s11 = sshll.u32 %s147_s0, 4  ;;  %s119_s12 = smov [#allocation2]   ;;  %s15_s11 = int_to_ptr.hbm [resolvable:$true] %s14_s11 }
   0x2   :  { %s16_s13 = sshll.u32 %s119_s12, 4  ;;  %s17_s13 = int_to_ptr.vmem [resolvable:$true] %s16_s13 }
   0x3   :  { %19 = dma.hbm_to_vmem [thread:$0]  %s15_s11, 256, %s17_s13, [#allocation3]  }
   0x4   :  { %115 = dma.done.wait [#allocation3], 256  }
   0x5   :  { %116 = vsyncadd [#allocation3], 4294967040  ;;  %v120_v0 = vmov 0   ;;  %v28_v1 = vld [vmem:[%s148_s1] sm:$0xff]  ;;  %v121_v2 = vmov 1   ;;  %v27_v5 = vld [vmem:[#allocation2 + $0x8] sm:$0xff] }
   0x6   :  { %65 = vset.pattern.permute.xlu0 %v120_v0  ;;  %v26_v4 = vld [vmem:[#allocation2] sm:$0xff]  ;;  %s122_s0 = smov [#allocation5]   ;;  %s51_s19 = sshll.u32 %s149_s2, 4  ;;  %s52_s19 = int_to_ptr.hbm [resolvable:$true] %s51_s19 }
   0x7   :  { %31 = vperm.xlu0 %65, %v28_v1   ;;  %s49_s16 = sshll.u32 %s122_s0, 4  ;;  %s50_s16 = int_to_ptr.vmem [resolvable:$true] %s49_s16 }
   0xf   :  { %66 = vset.pattern.permute.xlu0 %v121_v2 }
  0x10   :  { %37 = vperm.xlu0 %66, %v28_v1  }
  0x79   :  { %v32_v3 = vpop.permute.xlu0 %31 }
  0x7a   :  { %v34_v6 = vsub.f32 %v26_v4, %v32_v3  ;;  %v35_v7 = vsub.f32 %v27_v5, %v32_v3 }
  0x82   :  { %v38_v8 = vpop.permute.xlu0 %37 }
  0x83   :  { %v40_v9 = vmul.f32 %v38_v8, %v34_v6  ;;  %v41_v10 = vmul.f32 %v38_v8, %v35_v7 }
  0x85   :  { %42 = vst [vmem:[#allocation5] sm:$0xff] %v40_v9 }
  0x86   :  { %43 = vst [vmem:[#allocation5 + $0x8] sm:$0xff] %v41_v10 }
  0x87   :  { %54 = dma.vmem_to_hbm [thread:$0]  %s50_s16, 256, %s52_s19, [#allocation4]  }
  0x88   :  { %117 = dma.done.wait [#allocation4], 256  }
  0x89   :  { %118 = vsyncadd [#allocation4], 4294967040 }
  0x8a   :  { %59 = vsyncpa [#allocation3], 1 }
  0x8b   :  { %60 = vsyncpa [#allocation4], 1 }

</bundles_post_ra>
